<compile_context>
chip_gen: v5e
topology: v5e:2x2
jax: 0.10.0
libtpu: 0.0.40
codegen_flags: <defaults>
</compile_context>

<pallas_src>
from abc import ABC, abstractmethod
from typing import Any, Dict

import jax
import jax.numpy as jnp
from jax.experimental import pallas as pl
from jax.experimental.pallas import tpu as pltpu


# ----------------------------- helpers --------------------------------------

def _round_up(x: int, m: int) -> int:
    return ((x + m - 1) // m) * m


# ----------------------------- Pallas kernel --------------------------------

def _affine_kernel(x_ref, w_ref, b_ref, o_ref, acc_ref):
    """One (tm, tn) output tile of  y = x @ w + b, accumulated over the K axis.

    x_ref: (tm, tk) bf16    w_ref: (tk, tn) bf16    b_ref: (1, tn) f32
    o_ref: (tm, tn) f32     acc_ref: (tm, tn) f32 VMEM scratch
    """
    k = pl.program_id(2)

    @pl.when(k == 0)
    def _init():
        acc_ref[...] = jnp.zeros_like(acc_ref)

    acc_ref[...] += jnp.dot(
        x_ref[...], w_ref[...], preferred_element_type=jnp.float32
    )

    @pl.when(k == pl.num_programs(2) - 1)
    def _finalize():
        # Lean epilogue: bias add + cast + one unmasked lane-dense store.
        o_ref[...] = (acc_ref[...] + b_ref[...]).astype(o_ref.dtype)


def affine_forward(x: jax.Array, w: jax.Array, b: jax.Array,
                   *, tm: int = 256, tn: int = 256, tk: int = 512) -> jax.Array:
    """y = x @ w + b via a tiled Pallas TPU kernel.

    x: [B, in_dim] f32    w: [in_dim, out_dim] f32    b: [1, out_dim] f32
    returns [B, out_dim] f32 (bf16 MXU inputs, f32 accumulation).
    """
    batch, in_dim = x.shape
    in_dim_w, out_dim = w.shape
    assert in_dim == in_dim_w
    assert b.shape == (1, out_dim)

    # Clamp tiles to the (padded) problem while keeping (8, 128) alignment.
    # Defaults (256/256/512) suit the v6e 2x256 MXU; footprint stays ~2 MiB of
    # VMEM with double buffering, well inside the v7x 32 MiB scoped default.
    tm = max(8, min(tm, _round_up(batch, 8)))
    tn = max(128, min(tn, _round_up(out_dim, 128)))
    tk = max(128, min(tk, _round_up(in_dim, 128)))

    m_p = _round_up(batch, tm)
    n_p = _round_up(out_dim, tn)
    k_p = _round_up(in_dim, tk)

    # Pad to lane/sublane-dense tile multiples; feed the MXU bf16.
    x_p = jnp.pad(x, ((0, m_p - batch), (0, k_p - in_dim))).astype(jnp.bfloat16)
    w_p = jnp.pad(w, ((0, k_p - in_dim), (0, n_p - out_dim))).astype(jnp.bfloat16)
    b_p = jnp.pad(b, ((0, 0), (0, n_p - out_dim))).astype(jnp.float32)

    grid = (m_p // tm, n_p // tn, k_p // tk)

    cost = pl.CostEstimate(
        flops=2 * m_p * k_p * n_p,
        transcendentals=0,
        bytes_accessed=(x_p.size * 2 + w_p.size * 2 + b_p.size * 4
                        + m_p * n_p * 4),
    )

    out = pl.pallas_call(
        _affine_kernel,
        out_shape=jax.ShapeDtypeStruct((m_p, n_p), jnp.float32),
        grid=grid,
        in_specs=[
            pl.BlockSpec((tm, tk), lambda i, j, k: (i, k)),
            pl.BlockSpec((tk, tn), lambda i, j, k: (k, j)),
            # Bias depends only on the N tile: loaded once per j, resident
            # across the K reduction.
            pl.BlockSpec((1, tn), lambda i, j, k: (0, j)),
        ],
        out_specs=pl.BlockSpec((tm, tn), lambda i, j, k: (i, j)),
        scratch_shapes=[pltpu.VMEM((tm, tn), jnp.float32)],
        compiler_params=pltpu.CompilerParams(
            dimension_semantics=("parallel", "parallel", "arbitrary"),
        ),
        cost_estimate=cost,
    )(x_p, w_p, b_p)

    return out[:batch, :out_dim]


# --------------------------- Model class hierarchy ---------------------------

class BaseModel(ABC):
    """JAX port of the abstract base class (config plumbing only)."""

    @abstractmethod
    def __init__(self, config: Dict[str, Any]) -> None:
        self.config = config

    def get_model_config(self) -> Dict[str, Any]:
        return self.config

    @abstractmethod
    def forward(self, *args, **kwargs):
        """Forward pass of the model."""
        ...

    @abstractmethod
    def get_input_dims(self) -> int:
        ...

    @abstractmethod
    def get_output_dims(self) -> int:
        ...

    @classmethod
    def from_config(cls, config: Dict[str, Any]) -> "BaseModel":
        return cls(config)


class ConcreteModel(BaseModel):
    """Minimal concrete subclass: forward = tiled Pallas affine kernel."""

    def __init__(self, config: Dict[str, Any]) -> None:
        super().__init__(config)
        in_dim = config["input_dims"]
        out_dim = config["output_dims"]
        # Deterministic parameter init (synthetic, not a checkpoint load).
        kw, kb = jax.random.split(jax.random.PRNGKey(42))
        scale = 1.0 / jnp.sqrt(jnp.float32(in_dim))
        self.w = jax.random.uniform(
            kw, (in_dim, out_dim), jnp.float32, minval=-scale, maxval=scale
        )
        self.b = jax.random.uniform(
            kb, (1, out_dim), jnp.float32, minval=-scale, maxval=scale
        )

    def forward(self, x: jax.Array) -> jax.Array:
        return affine_forward(x, self.w, self.b)

    def get_input_dims(self) -> int:
        return self.config["input_dims"]

    def get_output_dims(self) -> int:
        return self.config["output_dims"]


# --------------------------------- main --------------------------------------

def _bf16_ref(x, w, b):
    """Reference with the same operand precision as the kernel (bf16 in, f32 acc)."""
    return jnp.dot(x.astype(jnp.bfloat16), w.astype(jnp.bfloat16),
                   preferred_element_type=jnp.float32) + b


if __name__ == "__main__":
    # --- Test 1: module-sized small shapes through the model class. ---------
    config = {"input_dims": 32, "output_dims": 32}
    model = ConcreteModel.from_config(config)

    batch = 8
    key = jax.random.PRNGKey(0)
    x = jax.random.normal(key, (batch, model.get_input_dims()), jnp.float32)

    y = jax.block_until_ready(model.forward(x))
    y_ref = _bf16_ref(x, model.w, model.b)
    assert y.shape == (batch, model.get_output_dims())
    assert jnp.allclose(y, y_ref, atol=1e-3, rtol=1e-3)

    # --- Test 2: exercise a multi-tile grid (K reduction > 1 step). ---------
    kx, kw2, kb2 = jax.random.split(jax.random.PRNGKey(1), 3)
    m2, k2, n2 = 24, 256, 256
    x2 = jax.random.normal(kx, (m2, k2), jnp.float32)
    w2 = jax.random.normal(kw2, (k2, n2), jnp.float32) / jnp.sqrt(jnp.float32(k2))
    b2 = jax.random.normal(kb2, (1, n2), jnp.float32)

    y2 = jax.block_until_ready(
        affine_forward(x2, w2, b2, tm=8, tn=128, tk=128)
    )
    y2_ref = _bf16_ref(x2, w2, b2)
    assert y2.shape == (m2, n2)
    assert jnp.allclose(y2, y2_ref, atol=2e-3, rtol=2e-3)

    print("KERNEL_OK")
</pallas_src>

<mosaic_0001>
module attributes {stable_mosaic.version = 11 : i64} {
  func.func @_affine_kernel(%arg0: i32, %arg1: i32, %arg2: i32, %arg3: memref<8x128xbf16, #tpu.memory_space<vmem>>, %arg4: memref<128x128xbf16, #tpu.memory_space<vmem>>, %arg5: memref<1x128xf32, #tpu.memory_space<vmem>>, %arg6: memref<8x128xf32, #tpu.memory_space<vmem>>, %arg7: memref<8x128xf32, #tpu.memory_space<vmem>>) attributes {dimension_semantics = [#tpu.dimension_semantics<parallel>, #tpu.dimension_semantics<parallel>, #tpu.dimension_semantics<arbitrary>], iteration_bounds = array<i64: 1, 1, 1>, scalar_prefetch = 0 : i64, scratch_operands = 1 : i64, tpu.core_type = #tpu.core_type<tc>, window_params = [{transform_indices = @transform_0, window_bounds = array<i64: 8, 128>}, {transform_indices = @transform_1, window_bounds = array<i64: 128, 128>}, {transform_indices = @transform_2, window_bounds = array<i64: 1, 128>}, {transform_indices = @transform_3, window_bounds = array<i64: 8, 128>}]} {
    %c0_i32 = arith.constant 0 : i32
    %0 = arith.cmpi eq, %arg2, %c0_i32 : i32
    %1 = arith.extui %0 : i1 to i32
    %c0_i32_0 = arith.constant 0 : i32
    %2 = arith.cmpi ne, %1, %c0_i32_0 : i32
    scf.if %2 {
      %cst_10 = arith.constant 0.000000e+00 : f32
      %12 = vector.broadcast %cst_10 : f32 to vector<8x128xf32>
      %c0_11 = arith.constant 0 : index
      %c0_12 = arith.constant 0 : index
      %13 = vector.load %arg7[%c0_11, %c0_12] : memref<8x128xf32, #tpu.memory_space<vmem>>, vector<8x128xf32>
      tpu.vector_store %arg7[%c0_11, %c0_12], %12 {strides = array<i32>} : memref<8x128xf32, #tpu.memory_space<vmem>>, vector<8x128xf32>,
    } else {
    }
    %c0 = arith.constant 0 : index
    %c0_1 = arith.constant 0 : index
    %3 = vector.load %arg7[%c0, %c0_1] : memref<8x128xf32, #tpu.memory_space<vmem>>, vector<8x128xf32>
    %c0_2 = arith.constant 0 : index
    %c0_3 = arith.constant 0 : index
    %4 = vector.load %arg3[%c0_2, %c0_3] : memref<8x128xbf16, #tpu.memory_space<vmem>>, vector<8x128xbf16>
    %c0_4 = arith.constant 0 : index
    %c0_5 = arith.constant 0 : index
    %5 = vector.load %arg4[%c0_4, %c0_5] : memref<128x128xbf16, #tpu.memory_space<vmem>>, vector<128x128xbf16>
    %cst = arith.constant dense<0.000000e+00> : vector<8x128xf32>
    %6 = tpu.matmul %4, %5, %cst {dimension_numbers = #tpu.dot_dimension_numbers<[1], [0], [0], [1], [0, 0, 1, 1], [], []>} : vector<8x128xbf16>, vector<128x128xbf16>, vector<8x128xf32> -> vector<8x128xf32>
    %7 = arith.addf %3, %6 : vector<8x128xf32>
    %c0_6 = arith.constant 0 : index
    %c0_7 = arith.constant 0 : index
    %8 = vector.load %arg7[%c0_6, %c0_7] : memref<8x128xf32, #tpu.memory_space<vmem>>, vector<8x128xf32>
    tpu.vector_store %arg7[%c0_6, %c0_7], %7 {strides = array<i32>} : memref<8x128xf32, #tpu.memory_space<vmem>>, vector<8x128xf32>,
    %c0_i32_8 = arith.constant 0 : i32
    %9 = arith.cmpi eq, %arg2, %c0_i32_8 : i32
    %10 = arith.extui %9 : i1 to i32
    %c0_i32_9 = arith.constant 0 : i32
    %11 = arith.cmpi ne, %10, %c0_i32_9 : i32
    scf.if %11 {
      %c0_10 = arith.constant 0 : index
      %c0_11 = arith.constant 0 : index
      %12 = vector.load %arg7[%c0_10, %c0_11] : memref<8x128xf32, #tpu.memory_space<vmem>>, vector<8x128xf32>
      %c0_12 = arith.constant 0 : index
      %c0_13 = arith.constant 0 : index
      %13 = vector.load %arg5[%c0_12, %c0_13] : memref<1x128xf32, #tpu.memory_space<vmem>>, vector<1x128xf32>
      %14 = vector.broadcast %13 : vector<1x128xf32> to vector<8x128xf32>
      %15 = arith.addf %12, %14 : vector<8x128xf32>
      %c0_14 = arith.constant 0 : index
      %c0_15 = arith.constant 0 : index
      %16 = vector.load %arg6[%c0_14, %c0_15] : memref<8x128xf32, #tpu.memory_space<vmem>>, vector<8x128xf32>
      tpu.vector_store %arg6[%c0_14, %c0_15], %15 {strides = array<i32>} : memref<8x128xf32, #tpu.memory_space<vmem>>, vector<8x128xf32>,
    } else {
    }
    return
  }
  func.func @transform_0(%arg0: i32, %arg1: i32, %arg2: i32) -> (i32, i32) {
    %c0_i32 = arith.constant 0 : i32
    return %arg0, %arg2 : i32, i32
  }
  func.func @transform_1(%arg0: i32, %arg1: i32, %arg2: i32) -> (i32, i32) {
    %c0_i32 = arith.constant 0 : i32
    return %arg2, %arg1 : i32, i32
  }
  func.func @transform_2(%arg0: i32, %arg1: i32, %arg2: i32) -> (i32, i32) {
    %c0_i32 = arith.constant 0 : i32
    %c0_i32_0 = arith.constant 0 : i32
    return %c0_i32, %arg1 : i32, i32
  }
  func.func @transform_3(%arg0: i32, %arg1: i32, %arg2: i32) -> (i32, i32) {
    %c0_i32 = arith.constant 0 : i32
    return %arg0, %arg1 : i32, i32
  }
}

</mosaic_0001>

<bundles_post_ra>
// kernel: tpu_custom_call.1
= control target key start
LH: loop header
LB: loop body
LE: loop exit
PB: predicated region body
PF: predicated region fallthrough
CT: control target
= control target key end

     0   :  { %8 = vsyncpa [#allocation4], 0  ;;  %s320_s0 = inlined_call_operand.hbm [shape: bf16[8,128], index: 0, kind: input, shape index: {}]   ;;  %s321_s1 = inlined_call_operand.hbm [shape: bf16[128,128], index: 1, kind: input, shape index: {}]   ;;  %s322_s2 = inlined_call_operand.vmem [shape: f32[1,128], index: 2, kind: input, shape index: {}]   ;;  %s323_s3 = inlined_call_operand.hbm [shape: f32[8,128], index: 3, kind: output, shape index: {}]  }
   0x1   :  { %9 = vsyncpa [#allocation7], 0 }
   0x2   :  { %10 = vsyncpa [#allocation5], 0  ;;  %s16_s14 = sshll.u32 %s320_s0, 4  ;;  %s283_s15 = smov [#allocation3]   ;;  %s17_s14 = int_to_ptr.hbm [resolvable:$true] %s16_s14 }
   0x3   :  { %s18_s16 = sshll.u32 %s283_s15, 4  ;;  %s26_s19 = sshll.u32 %s321_s1, 4  ;;  %s19_s16 = int_to_ptr.vmem [resolvable:$true] %s18_s16  ;;  %s27_s19 = int_to_ptr.hbm [resolvable:$true] %s26_s19 }
   0x4   :  { %21 = dma.hbm_to_vmem [thread:$0]  %s17_s14, 64, %s19_s16, [#allocation4]  }
   0x5   :  { %s284_s20 = smov [#allocation6]   ;;  %s285_s22 = smov 64  }
   0x6   :  { %s28_s21 = sshll.u32 %s284_s20, 4  ;;  %s286_s23 = smov 4   ;;  %s29_s21 = int_to_ptr.vmem [resolvable:$true] %s28_s21 }
   0x7   :  { %34 = dma.hbm_to_vmem [thread:$0]  %s27_s19, 1024, %s29_s21, [#allocation7], %s285_s22, %s285_s22, %s286_s23  }
   0x8   :  { %277 = dma.done.wait [#allocation4], 64  }
   0x9   :  { %278 = vsyncadd [#allocation4], 4294967232 }
   0xa   :  { %279 = dma.done.wait [#allocation7], 1024  }
   0xb   :  { %280 = vsyncadd [#allocation7], 4294966272  ;;  %v198_v0 = vld [vmem:[#allocation6 + $0x38] sm:$0xff]  ;;  %v197_v1 = vld [vmem:[#allocation6 + $0x30] sm:$0xff]  ;;  %s287_s24 = smov [#allocation8]   ;;  %s148_s28 = sshll.u32 %s323_s3, 4  ;;  %s149_s28 = int_to_ptr.hbm [resolvable:$true] %s148_s28 }
   0xc   :  { %116 = vmatpush.bf16.msra.mxu0 %v198_v0  ;;  %v196_v2 = vld [vmem:[#allocation6 + $0x28] sm:$0xff]  ;;  %v195_v3 = vld [vmem:[#allocation6 + $0x20] sm:$0xff]  ;;  %v194_v4 = vld [vmem:[#allocation6 + $0x18] sm:$0xff]  ;;  %s146_s25 = sshll.u32 %s287_s24, 4  ;;  %s147_s25 = int_to_ptr.vmem [resolvable:$true] %s146_s25 }
   0xd   :  { %v193_v5 = vld [vmem:[#allocation6 + $0x10] sm:$0xff]  ;;  %v192_v6 = vld [vmem:[#allocation6 + $0x8] sm:$0xff]  ;;  %v191_v7 = vld [vmem:[#allocation6] sm:$0xff] }
   0xe   :  { %v51_v8 = vld [vmem:[#allocation3] sm:$0xf] }
   0xf   :  { %v204_v9 = vld [vmem:[%s322_s2] ss:$0 sm:$0xff] }
  0x10   :  { %117 = vmatpush.bf16.msra.mxu0 %v197_v1 }
  0x14   :  { %118 = vmatpush.bf16.msra.mxu0 %v196_v2 }
  0x18   :  { %119 = vmatpush.bf16.msra.mxu0 %v195_v3 }
  0x1c   :  { %120 = vmatpush.bf16.msra.mxu0 %v194_v4 }
  0x20   :  { %121 = vmatpush.bf16.msra.mxu0 %v193_v5 }
  0x24   :  { %122 = vmatpush.bf16.msra.mxu0 %v192_v6 }
  0x28   :  { %123 = vmatpush.bf16.msra.mxu0 %v191_v7 }
  0x2b   :  { %124 = vmatmul.bf16.vlgmr.msra.gmra.mxu0 %v51_v8 }
  0xa8   :  { %v125_v10 = vpop.f32.mrf.mxu0 }
  0xa9   :  { %v139_v11 = vadd.f32 %v204_v9, %v125_v10 }
  0xab   :  { %140 = vst [vmem:[#allocation8] sm:$0xff] %v139_v11 }
  0xac   :  { %151 = dma.vmem_to_hbm [thread:$0]  %s147_s25, 128, %s149_s28, [#allocation5]  }
  0xb0   :  { %v127_v12 = vpop.f32.mrf.mxu0 }
  0xb1   :  { %281 = dma.done.wait [#allocation5], 128  }
  0xb2   :  { %282 = vsyncadd [#allocation5], 4294967168 }
  0xb3   :  { %156 = vsyncpa [#allocation4], 1 }
  0xb4   :  { %157 = vsyncpa [#allocation7], 1 }
  0xb5   :  { %158 = vsyncpa [#allocation5], 1 }

</bundles_post_ra>
